<compile_context>
chip_gen: v5e
topology: v5e:2x2
jax: 0.10.0
libtpu: 0.0.40
codegen_flags: <defaults>
</compile_context>

<pallas_src>
import functools
import math

import jax
import jax.numpy as jnp
from jax.experimental import pallas as pl
from jax.experimental.pallas import tpu as pltpu

LANE = 128
SUBLANE = 8


def _round_up(x, m):
    return ((x + m - 1) // m) * m


def _pad2(a, rows, cols):
    r, c = a.shape
    return jnp.pad(a, ((0, rows - r), (0, cols - c)))


# ----------------------------------------------------------------------------
# One-time probe: can resident parameters be single-buffered?
# ----------------------------------------------------------------------------
def _probe_single_buffer():
    if not hasattr(pl, "Buffered"):
        return None
    try:
        spec = pl.BlockSpec((8, 128), lambda i: (0, 0), pipeline_mode=pl.Buffered(1))

        def _k(a_ref, o_ref):
            o_ref[...] = a_ref[...]

        pl.pallas_call(
            _k,
            out_shape=jax.ShapeDtypeStruct((8, 128), jnp.float32),
            grid_spec=pltpu.PrefetchScalarGridSpec(
                num_scalar_prefetch=0,
                grid=(1,),
                in_specs=[spec],
                out_specs=pl.BlockSpec((8, 128), lambda i: (0, 0)),
            ),
        )(jnp.zeros((8, 128), jnp.float32)).block_until_ready()
        return pl.Buffered(1)
    except Exception:
        return None


_BUFFERED_1 = _probe_single_buffer()


def _param_spec(shape):
    """Constant-index BlockSpec for a VMEM-resident layer parameter."""
    idx = lambda i, _n=len(shape): (0,) * _n
    if _BUFFERED_1 is not None:
        return pl.BlockSpec(shape, idx, pipeline_mode=_BUFFERED_1)
    return pl.BlockSpec(shape, idx)


# ----------------------------------------------------------------------------
# Generation-aware VMEM budget / batch tiling
# ----------------------------------------------------------------------------
@functools.lru_cache(maxsize=1)
def _vmem_budget():
    """(vmem_limit_bytes, tile_n_max) sized per TPU generation."""
    cap = 128 * 1024 * 1024
    try:
        cap = int(pltpu.get_tpu_info().vmem_capacity_bytes)
    except Exception:
        pass
    if cap >= 128 * 1024 * 1024:          # v5e / v6e: 128 MiB physical VMEM
        return 96 * 1024 * 1024, 2048
    return 48 * 1024 * 1024, 1024         # v7x-class: 64 MiB physical


def _choose_batch_tiling(n, in_width, out_widths, act_width, weight_bytes):
    """Pick (tile_n, n_pad) under the per-generation VMEM budget."""
    budget, tile_n_max = _vmem_budget()
    # per-row f32 bytes: double-buffered input/output tiles + ~2x widest
    # activation working set inside the kernel body.
    per_row = 4 * (2 * in_width + 2 * sum(out_widths) + 2 * act_width)
    avail = budget - weight_bytes - (4 << 20)        # 4 MiB slack
    cap = max(SUBLANE, (avail // max(per_row, 1)) // SUBLANE * SUBLANE)
    tile_n_max = max(SUBLANE, min(tile_n_max, cap))

    n8 = _round_up(max(n, 1), SUBLANE)
    steps = max(1, math.ceil(n8 / tile_n_max))
    # v7x has 2 TensorCores: give the "parallel" batch grid >=2 (even) steps
    # whenever the batch is big enough to be worth splitting.
    if steps == 1 and n8 >= 512:
        steps = 2
    if steps > 1 and steps % 2:
        steps += 1
    tile_n = _round_up(math.ceil(n8 / steps), SUBLANE)   # rebalanced tile
    steps = math.ceil(n8 / tile_n)
    return tile_n, tile_n * steps


# ----------------------------------------------------------------------------
# Fused kernels (whole forward pass in one body; static unrolled layer loop)
# ----------------------------------------------------------------------------
def _sigmoid(y):
    # sigmoid via a single EUP tanh (cheaper than exp + reciprocal/divide).
    return 0.5 * (jnp.tanh(0.5 * y) + 1.0)


def _sae_supervised_kernel(x_ref, *refs, n_layers, matmul_dtype):
    # refs = (w_0, b_0, ..., w_{L-1}, b_{L-1}, o_ref); each w_i padded to its
    # own lane-aligned shape, biases are (1, dout_i_pad) f32.
    o_ref = refs[-1]
    h = x_ref[...]
    for i in range(n_layers):
        y = jnp.dot(h.astype(matmul_dtype), refs[2 * i][...],
                    preferred_element_type=jnp.float32) + refs[2 * i + 1][...]
        # last layer is the projection -> tanh; encoder layers -> sigmoid
        h = jnp.tanh(y) if i == n_layers - 1 else _sigmoid(y)
    o_ref[...] = h.astype(o_ref.dtype)


def _sae_pretrain_kernel(x_ref, *refs, n_pre, matmul_dtype):
    # first n_pre stacked layers are the frozen encoders (rep=True),
    # layer n_pre is encoder #NoL, layer n_pre+1 is decoder #NoL.
    inp_ref, rec_ref = refs[-2], refs[-1]
    h = x_ref[...]
    for i in range(n_pre):
        y = jnp.dot(h.astype(matmul_dtype), refs[2 * i][...],
                    preferred_element_type=jnp.float32) + refs[2 * i + 1][...]
        h = _sigmoid(y)
    inp_ref[...] = h.astype(inp_ref.dtype)
    y = jnp.dot(h.astype(matmul_dtype), refs[2 * n_pre][...],
                preferred_element_type=jnp.float32) + refs[2 * n_pre + 1][...]
    h = _sigmoid(y)
    y = jnp.dot(h.astype(matmul_dtype), refs[2 * (n_pre + 1)][...],
                preferred_element_type=jnp.float32) + refs[2 * (n_pre + 1) + 1][...]
    rec_ref[...] = _sigmoid(y).astype(rec_ref.dtype)


# ----------------------------------------------------------------------------
# Wrappers: per-layer lane-aligned padding, grid over N
# ----------------------------------------------------------------------------
def _prepare_layers(ws, bs, d_in, matmul_dtype):
    """Pad each layer to its own lane-aligned shape (zero padding — required so
    sigmoid(0)=0.5 dead lanes are cancelled by zero weight rows downstream)."""
    d_prev = d_in
    flat_args, specs = [], []
    widths = [_round_up(d_in, LANE)]
    for w, b in zip(ws, bs):
        assert w.shape[0] == d_prev, "layer widths must chain"
        dip = _round_up(w.shape[0], LANE)
        dop = _round_up(w.shape[1], LANE)
        wp = _pad2(w.astype(jnp.float32), dip, dop).astype(matmul_dtype)
        bp = jnp.pad(b.astype(jnp.float32), (0, dop - b.shape[0]))[None, :]
        flat_args += [wp, bp]
        specs += [_param_spec((dip, dop)), _param_spec((1, dop))]
        widths.append(dop)
        d_prev = w.shape[1]
    return flat_args, specs, widths


def _resident_param_bytes(flat_args):
    bufs = 1 if _BUFFERED_1 is not None else 2
    return bufs * sum(int(a.size) * a.dtype.itemsize for a in flat_args)


def _sae_supervised(params, x, matmul_dtype):
    n, d_in = x.shape
    ws = list(params["enc_w"]) + [params["proj_w"]]
    bs = list(params["enc_b"]) + [params["proj_b"]]
    n_layers = len(ws)

    p_args, p_specs, widths = _prepare_layers(ws, bs, d_in, matmul_dtype)
    din_pad, out_pad = widths[0], widths[-1]            # out_pad == 128 (proj -> 1)

    tile_n, n_pad = _choose_batch_tiling(
        n, din_pad, [out_pad], max(widths), _resident_param_bytes(p_args))
    x_pad = jnp.pad(x, ((0, n_pad - n), (0, din_pad - d_in)))
    grid = (n_pad // tile_n,)
    vmem_limit, _ = _vmem_budget()

    out = pl.pallas_call(
        functools.partial(_sae_supervised_kernel, n_layers=n_layers,
                          matmul_dtype=matmul_dtype),
        out_shape=jax.ShapeDtypeStruct((n_pad, out_pad), x.dtype),
        grid_spec=pltpu.PrefetchScalarGridSpec(
            num_scalar_prefetch=0,
            grid=grid,
            in_specs=[pl.BlockSpec((tile_n, din_pad), lambda i: (i, 0))] + p_specs,
            out_specs=pl.BlockSpec((tile_n, out_pad), lambda i: (i, 0)),
        ),
        compiler_params=pltpu.CompilerParams(
            dimension_semantics=("parallel",),
            vmem_limit_bytes=int(vmem_limit)),
    )(x_pad, *p_args)
    # projection result lives in column 0 of the 128-lane output slab
    return out[:n, :1]


def _sae_pretrain(params, x, NoL, matmul_dtype):
    n, d_in = x.shape
    n_ae = len(params["enc_w"])
    assert 0 <= NoL < n_ae, "NoL must index an existing AutoEncoder layer"

    ws = [params["enc_w"][i] for i in range(NoL + 1)] + [params["dec_w"][NoL]]
    bs = [params["enc_b"][i] for i in range(NoL + 1)] + [params["dec_b"][NoL]]

    p_args, p_specs, widths = _prepare_layers(ws, bs, d_in, matmul_dtype)
    din_pad = widths[0]
    inp_pad = widths[NoL]                 # width after the first NoL encoders
    rec_pad = widths[-1]                  # decoder output width
    inp_width = d_in if NoL == 0 else params["enc_w"][NoL - 1].shape[1]
    rec_width = params["dec_w"][NoL].shape[1]

    tile_n, n_pad = _choose_batch_tiling(
        n, din_pad, [inp_pad, rec_pad], max(widths), _resident_param_bytes(p_args))
    x_pad = jnp.pad(x, ((0, n_pad - n), (0, din_pad - d_in)))
    grid = (n_pad // tile_n,)
    vmem_limit, _ = _vmem_budget()

    inp, rec = pl.pallas_call(
        functools.partial(_sae_pretrain_kernel, n_pre=NoL, matmul_dtype=matmul_dtype),
        out_shape=(jax.ShapeDtypeStruct((n_pad, inp_pad), x.dtype),
                   jax.ShapeDtypeStruct((n_pad, rec_pad), x.dtype)),
        grid_spec=pltpu.PrefetchScalarGridSpec(
            num_scalar_prefetch=0,
            grid=grid,
            in_specs=[pl.BlockSpec((tile_n, din_pad), lambda i: (i, 0))] + p_specs,
            out_specs=(pl.BlockSpec((tile_n, inp_pad), lambda i: (i, 0)),
                       pl.BlockSpec((tile_n, rec_pad), lambda i: (i, 0))),
        ),
        compiler_params=pltpu.CompilerParams(
            dimension_semantics=("parallel",),
            vmem_limit_bytes=int(vmem_limit)),
    )(x_pad, *p_args)
    return inp[:n, :inp_width], rec[:n, :rec_width]


def sae_forward(params, x, NoL=0, PreTrain=False, matmul_dtype=jnp.bfloat16):
    """StackedAutoEncoder.forward (matmul_dtype=jnp.float32 for exact math)."""
    if PreTrain:
        return _sae_pretrain(params, x, NoL, matmul_dtype)
    return _sae_supervised(params, x, matmul_dtype)


# ----------------------------------------------------------------------------
# Parameter construction (deterministic, mimics nn.Linear default init:
# uniform(-1/sqrt(fan_in), 1/sqrt(fan_in)) for both weight and bias).
# Weights are stored pre-transposed as (D_in, D_out).
# ----------------------------------------------------------------------------
def _init_linear(key, d_in, d_out, dtype=jnp.float32):
    kw, kb = jax.random.split(key)
    bound = 1.0 / math.sqrt(d_in)
    w = jax.random.uniform(kw, (d_in, d_out), dtype, minval=-bound, maxval=bound)
    b = jax.random.uniform(kb, (d_out,), dtype, minval=-bound, maxval=bound)
    return w, b


def init_stacked_autoencoder(key, size):
    """size: list of layer widths, e.g. [dim_X, H1, H2, ...]."""
    params = {"enc_w": [], "enc_b": [], "dec_w": [], "dec_b": []}
    n_ae = len(size) - 1
    keys = jax.random.split(key, 2 * n_ae + 1)
    for i in range(n_ae):
        ew, eb = _init_linear(keys[2 * i], size[i], size[i + 1])          # enc: X -> H
        dw, db = _init_linear(keys[2 * i + 1], size[i + 1], size[i] + 1)  # dec: H -> X+1
        params["enc_w"].append(ew)
        params["enc_b"].append(eb)
        params["dec_w"].append(dw)
        params["dec_b"].append(db)
    pw, pb = _init_linear(keys[-1], size[-1], 1)                          # proj -> 1
    params["proj_w"] = pw
    params["proj_b"] = pb
    return params


# ----------------------------------------------------------------------------
# Pure-JAX references for correctness checks.
# ----------------------------------------------------------------------------
def sae_forward_ref(params, x):
    out = x
    for w, b in zip(params["enc_w"], params["enc_b"]):
        out = jax.nn.sigmoid(out @ w + b)
    return jnp.tanh(out @ params["proj_w"] + params["proj_b"])


def sae_pretrain_ref(params, x, NoL):
    out = x
    for i in range(NoL):
        out = jax.nn.sigmoid(out @ params["enc_w"][i] + params["enc_b"][i])
    inputs = out
    h = jax.nn.sigmoid(out @ params["enc_w"][NoL] + params["enc_b"][NoL])
    rec = jax.nn.sigmoid(h @ params["dec_w"][NoL] + params["dec_b"][NoL])
    return inputs, rec


if __name__ == "__main__":
    key = jax.random.PRNGKey(0)
    k_param, k_x, k_x2 = jax.random.split(key, 3)

    size = [16, 32, 24, 8]          # 3 autoencoder layers + proj(8 -> 1)
    batch = 8
    params = init_stacked_autoencoder(k_param, size)
    x = jax.random.normal(k_x, (batch, size[0]), jnp.float32)

    # --- supervised path, exact-semantics check (f32 MXU path) ---------------
    y32 = jax.block_until_ready(sae_forward(params, x, matmul_dtype=jnp.float32))
    assert y32.shape == (batch, 1), y32.shape
    y_ref = sae_forward_ref(params, x)
    assert jnp.allclose(y32, y_ref, atol=1e-4, rtol=1e-4), "supervised f32 mismatch"

    # --- supervised path, default bf16 MXU path (looser tolerance) -----------
    y = jax.block_until_ready(sae_forward(params, x))
    assert y.shape == (batch, 1), y.shape
    assert jnp.allclose(y, y_ref, atol=5e-2, rtol=5e-2), "supervised bf16 mismatch"

    # --- pretrain path, NoL=1: (inputs, reconstruction), f32 exact -----------
    inp, rec = jax.block_until_ready(
        sae_forward(params, x, NoL=1, PreTrain=True, matmul_dtype=jnp.float32))
    assert inp.shape == (batch, size[1]), inp.shape
    assert rec.shape == (batch, size[1] + 1), rec.shape
    inp_ref, rec_ref = sae_pretrain_ref(params, x, 1)
    assert jnp.allclose(inp, inp_ref, atol=1e-4, rtol=1e-4), "pretrain inputs mismatch"
    assert jnp.allclose(rec, rec_ref, atol=1e-4, rtol=1e-4), "pretrain rec mismatch"

    # --- pretrain path, NoL=0: returns (X, SAE[0](X)), bf16 path -------------
    inp0, rec0 = jax.block_until_ready(sae_forward(params, x, NoL=0, PreTrain=True))
    inp0_ref, rec0_ref = sae_pretrain_ref(params, x, 0)
    assert jnp.allclose(inp0, inp0_ref, atol=5e-2, rtol=5e-2), "pretrain(0) inputs mismatch"
    assert jnp.allclose(rec0, rec0_ref, atol=5e-2, rtol=5e-2), "pretrain(0) rec mismatch"

    # --- larger, non-multiple batch: exercises rebalanced multi-step grid ----
    big_n = 1000
    xb = jax.random.normal(k_x2, (big_n, size[0]), jnp.float32)
    yb32 = jax.block_until_ready(sae_forward(params, xb, matmul_dtype=jnp.float32))
    assert yb32.shape == (big_n, 1), yb32.shape
    assert jnp.allclose(yb32, sae_forward_ref(params, xb), atol=1e-4, rtol=1e-4), \
        "large-batch f32 mismatch"
    yb = jax.block_until_ready(sae_forward(params, xb))
    assert jnp.allclose(yb, sae_forward_ref(params, xb), atol=5e-2, rtol=5e-2), \
        "large-batch bf16 mismatch"

    print("KERNEL_OK")
</pallas_src>

<mosaic_0001>
module attributes {stable_mosaic.version = 11 : i64} {
  func.func @_k(%arg0: i32, %arg1: memref<8x128xf32, #tpu.memory_space<vmem>>, %arg2: memref<8x128xf32, #tpu.memory_space<vmem>>) attributes {dimension_semantics = [#tpu.dimension_semantics<arbitrary>], iteration_bounds = array<i64: 1>, scalar_prefetch = 0 : i64, scratch_operands = 0 : i64, tpu.core_type = #tpu.core_type<tc>, window_params = [{pipeline_mode = #tpu.pipeline_mode<synchronous>, transform_indices = @transform_0, window_bounds = array<i64: 8, 128>}, {pipeline_mode = #tpu.pipeline_mode<synchronous>, transform_indices = @transform_1, window_bounds = array<i64: 8, 128>}]} {
    %c0 = arith.constant 0 : index
    %c0_0 = arith.constant 0 : index
    %0 = vector.load %arg1[%c0, %c0_0] : memref<8x128xf32, #tpu.memory_space<vmem>>, vector<8x128xf32>
    %c0_1 = arith.constant 0 : index
    %c0_2 = arith.constant 0 : index
    %1 = vector.load %arg2[%c0_1, %c0_2] : memref<8x128xf32, #tpu.memory_space<vmem>>, vector<8x128xf32>
    tpu.vector_store %arg2[%c0_1, %c0_2], %0 {strides = array<i32>} : memref<8x128xf32, #tpu.memory_space<vmem>>, vector<8x128xf32>,
    return
  }
  func.func @transform_0(%arg0: i32) -> (i32, i32) {
    %c0_i32 = arith.constant 0 : i32
    %c0_i32_0 = arith.constant 0 : i32
    %c0_i32_1 = arith.constant 0 : i32
    return %c0_i32, %c0_i32_0 : i32, i32
  }
  func.func @transform_1(%arg0: i32) -> (i32, i32) {
    %c0_i32 = arith.constant 0 : i32
    %c0_i32_0 = arith.constant 0 : i32
    %c0_i32_1 = arith.constant 0 : i32
    return %c0_i32, %c0_i32_0 : i32, i32
  }
}

module attributes {stable_mosaic.version = 11 : i64} {
  func.func @_sae_supervised_kernel(%arg0: i32, %arg1: memref<8x128xf32, #tpu.memory_space<vmem>>, %arg2: memref<128x128xf32, #tpu.memory_space<vmem>>, %arg3: memref<1x128xf32, #tpu.memory_space<vmem>>, %arg4: memref<128x128xf32, #tpu.memory_space<vmem>>, %arg5: memref<1x128xf32, #tpu.memory_space<vmem>>, %arg6: memref<128x128xf32, #tpu.memory_space<vmem>>, %arg7: memref<1x128xf32, #tpu.memory_space<vmem>>, %arg8: memref<128x128xf32, #tpu.memory_space<vmem>>, %arg9: memref<1x128xf32, #tpu.memory_space<vmem>>, %arg10: memref<8x128xf32, #tpu.memory_space<vmem>>) attributes {dimension_semantics = [#tpu.dimension_semantics<parallel>], iteration_bounds = array<i64: 1>, scalar_prefetch = 0 : i64, scratch_operands = 0 : i64, tpu.core_type = #tpu.core_type<tc>, window_params = [{transform_indices = @transform_0, window_bounds = array<i64: 8, 128>}, {pipeline_mode = #tpu.pipeline_mode<synchronous>, transform_indices = @transform_1, window_bounds = array<i64: 128, 128>}, {pipeline_mode = #tpu.pipeline_mode<synchronous>, transform_indices = @transform_2, window_bounds = array<i64: 1, 128>}, {pipeline_mode = #tpu.pipeline_mode<synchronous>, transform_indices = @transform_3, window_bounds = array<i64: 128, 128>}, {pipeline_mode = #tpu.pipeline_mode<synchronous>, transform_indices = @transform_4, window_bounds = array<i64: 1, 128>}, {pipeline_mode = #tpu.pipeline_mode<synchronous>, transform_indices = @transform_5, window_bounds = array<i64: 128, 128>}, {pipeline_mode = #tpu.pipeline_mode<synchronous>, transform_indices = @transform_6, window_bounds = array<i64: 1, 128>}, {pipeline_mode = #tpu.pipeline_mode<synchronous>, transform_indices = @transform_7, window_bounds = array<i64: 128, 128>}, {pipeline_mode = #tpu.pipeline_mode<synchronous>, transform_indices = @transform_8, window_bounds = array<i64: 1, 128>}, {transform_indices = @transform_9, window_bounds = array<i64: 8, 128>}]} {
    %c0 = arith.constant 0 : index
    %c0_0 = arith.constant 0 : index
    %0 = vector.load %arg1[%c0, %c0_0] : memref<8x128xf32, #tpu.memory_space<vmem>>, vector<8x128xf32>
    %c0_1 = arith.constant 0 : index
    %c0_2 = arith.constant 0 : index
    %1 = vector.load %arg2[%c0_1, %c0_2] : memref<128x128xf32, #tpu.memory_space<vmem>>, vector<128x128xf32>
    %cst = arith.constant dense<0.000000e+00> : vector<8x128xf32>
    %2 = tpu.matmul %0, %1, %cst {dimension_numbers = #tpu.dot_dimension_numbers<[1], [0], [0], [1], [0, 0, 1, 1], [], []>} : vector<8x128xf32>, vector<128x128xf32>, vector<8x128xf32> -> vector<8x128xf32>
    %c0_3 = arith.constant 0 : index
    %c0_4 = arith.constant 0 : index
    %3 = vector.load %arg3[%c0_3, %c0_4] : memref<1x128xf32, #tpu.memory_space<vmem>>, vector<1x128xf32>
    %4 = vector.broadcast %3 : vector<1x128xf32> to vector<8x128xf32>
    %5 = arith.addf %2, %4 : vector<8x128xf32>
    %cst_5 = arith.constant 5.000000e-01 : f32
    %6 = vector.broadcast %cst_5 : f32 to vector<8x128xf32>
    %7 = arith.mulf %6, %5 : vector<8x128xf32>
    %8 = math.tanh %7 : vector<8x128xf32>
    %cst_6 = arith.constant 1.000000e+00 : f32
    %9 = vector.broadcast %cst_6 : f32 to vector<8x128xf32>
    %10 = arith.addf %8, %9 : vector<8x128xf32>
    %cst_7 = arith.constant 5.000000e-01 : f32
    %11 = vector.broadcast %cst_7 : f32 to vector<8x128xf32>
    %12 = arith.mulf %11, %10 : vector<8x128xf32>
    %c0_8 = arith.constant 0 : index
    %c0_9 = arith.constant 0 : index
    %13 = vector.load %arg4[%c0_8, %c0_9] : memref<128x128xf32, #tpu.memory_space<vmem>>, vector<128x128xf32>
    %cst_10 = arith.constant dense<0.000000e+00> : vector<8x128xf32>
    %14 = tpu.matmul %12, %13, %cst_10 {dimension_numbers = #tpu.dot_dimension_numbers<[1], [0], [0], [1], [0, 0, 1, 1], [], []>} : vector<8x128xf32>, vector<128x128xf32>, vector<8x128xf32> -> vector<8x128xf32>
    %c0_11 = arith.constant 0 : index
    %c0_12 = arith.constant 0 : index
    %15 = vector.load %arg5[%c0_11, %c0_12] : memref<1x128xf32, #tpu.memory_space<vmem>>, vector<1x128xf32>
    %16 = vector.broadcast %15 : vector<1x128xf32> to vector<8x128xf32>
    %17 = arith.addf %14, %16 : vector<8x128xf32>
    %cst_13 = arith.constant 5.000000e-01 : f32
    %18 = vector.broadcast %cst_13 : f32 to vector<8x128xf32>
    %19 = arith.mulf %18, %17 : vector<8x128xf32>
    %20 = math.tanh %19 : vector<8x128xf32>
    %cst_14 = arith.constant 1.000000e+00 : f32
    %21 = vector.broadcast %cst_14 : f32 to vector<8x128xf32>
    %22 = arith.addf %20, %21 : vector<8x128xf32>
    %cst_15 = arith.constant 5.000000e-01 : f32
    %23 = vector.broadcast %cst_15 : f32 to vector<8x128xf32>
    %24 = arith.mulf %23, %22 : vector<8x128xf32>
    %c0_16 = arith.constant 0 : index
    %c0_17 = arith.constant 0 : index
    %25 = vector.load %arg6[%c0_16, %c0_17] : memref<128x128xf32, #tpu.memory_space<vmem>>, vector<128x128xf32>
    %cst_18 = arith.constant dense<0.000000e+00> : vector<8x128xf32>
    %26 = tpu.matmul %24, %25, %cst_18 {dimension_numbers = #tpu.dot_dimension_numbers<[1], [0], [0], [1], [0, 0, 1, 1], [], []>} : vector<8x128xf32>, vector<128x128xf32>, vector<8x128xf32> -> vector<8x128xf32>
    %c0_19 = arith.constant 0 : index
    %c0_20 = arith.constant 0 : index
    %27 = vector.load %arg7[%c0_19, %c0_20] : memref<1x128xf32, #tpu.memory_space<vmem>>, vector<1x128xf32>
    %28 = vector.broadcast %27 : vector<1x128xf32> to vector<8x128xf32>
    %29 = arith.addf %26, %28 : vector<8x128xf32>
    %cst_21 = arith.constant 5.000000e-01 : f32
    %30 = vector.broadcast %cst_21 : f32 to vector<8x128xf32>
    %31 = arith.mulf %30, %29 : vector<8x128xf32>
    %32 = math.tanh %31 : vector<8x128xf32>
    %cst_22 = arith.constant 1.000000e+00 : f32
    %33 = vector.broadcast %cst_22 : f32 to vector<8x128xf32>
    %34 = arith.addf %32, %33 : vector<8x128xf32>
    %cst_23 = arith.constant 5.000000e-01 : f32
    %35 = vector.broadcast %cst_23 : f32 to vector<8x128xf32>
    %36 = arith.mulf %35, %34 : vector<8x128xf32>
    %c0_24 = arith.constant 0 : index
    %c0_25 = arith.constant 0 : index
    %37 = vector.load %arg8[%c0_24, %c0_25] : memref<128x128xf32, #tpu.memory_space<vmem>>, vector<128x128xf32>
    %cst_26 = arith.constant dense<0.000000e+00> : vector<8x128xf32>
    %38 = tpu.matmul %36, %37, %cst_26 {dimension_numbers = #tpu.dot_dimension_numbers<[1], [0], [0], [1], [0, 0, 1, 1], [], []>} : vector<8x128xf32>, vector<128x128xf32>, vector<8x128xf32> -> vector<8x128xf32>
    %c0_27 = arith.constant 0 : index
    %c0_28 = arith.constant 0 : index
    %39 = vector.load %arg9[%c0_27, %c0_28] : memref<1x128xf32, #tpu.memory_space<vmem>>, vector<1x128xf32>
    %40 = vector.broadcast %39 : vector<1x128xf32> to vector<8x128xf32>
    %41 = arith.addf %38, %40 : vector<8x128xf32>
    %42 = math.tanh %41 : vector<8x128xf32>
    %c0_29 = arith.constant 0 : index
    %c0_30 = arith.constant 0 : index
    %43 = vector.load %arg10[%c0_29, %c0_30] : memref<8x128xf32, #tpu.memory_space<vmem>>, vector<8x128xf32>
    tpu.vector_store %arg10[%c0_29, %c0_30], %42 {strides = array<i32>} : memref<8x128xf32, #tpu.memory_space<vmem>>, vector<8x128xf32>,
    return
  }
  func.func @transform_0(%arg0: i32) -> (i32, i32) {
    %c0_i32 = arith.constant 0 : i32
    %c0_i32_0 = arith.constant 0 : i32
    return %arg0, %c0_i32 : i32, i32
  }
  func.func @transform_1(%arg0: i32) -> (i32, i32) {
    %c0_i32 = arith.constant 0 : i32
    %c0_i32_0 = arith.constant 0 : i32
    %c0_i32_1 = arith.constant 0 : i32
    return %c0_i32, %c0_i32_0 : i32, i32
  }
  func.func @transform_2(%arg0: i32) -> (i32, i32) {
    %c0_i32 = arith.constant 0 : i32
    %c0_i32_0 = arith.constant 0 : i32
    %c0_i32_1 = arith.constant 0 : i32
    return %c0_i32, %c0_i32_0 : i32, i32
  }
  func.func @transform_3(%arg0: i32) -> (i32, i32) {
    %c0_i32 = arith.constant 0 : i32
    %c0_i32_0 = arith.constant 0 : i32
    %c0_i32_1 = arith.constant 0 : i32
    return %c0_i32, %c0_i32_0 : i32, i32
  }
  func.func @transform_4(%arg0: i32) -> (i32, i32) {
    %c0_i32 = arith.constant 0 : i32
    %c0_i32_0 = arith.constant 0 : i32
    %c0_i32_1 = arith.constant 0 : i32
    return %c0_i32, %c0_i32_0 : i32, i32
  }
  func.func @transform_5(%arg0: i32) -> (i32, i32) {
    %c0_i32 = arith.constant 0 : i32
    %c0_i32_0 = arith.constant 0 : i32
    %c0_i32_1 = arith.constant 0 : i32
    return %c0_i32, %c0_i32_0 : i32, i32
  }
  func.func @transform_6(%arg0: i32) -> (i32, i32) {
    %c0_i32 = arith.constant 0 : i32
    %c0_i32_0 = arith.constant 0 : i32
    %c0_i32_1 = arith.constant 0 : i32
    return %c0_i32, %c0_i32_0 : i32, i32
  }
  func.func @transform_7(%arg0: i32) -> (i32, i32) {
    %c0_i32 = arith.constant 0 : i32
    %c0_i32_0 = arith.constant 0 : i32
    %c0_i32_1 = arith.constant 0 : i32
    return %c0_i32, %c0_i32_0 : i32, i32
  }
  func.func @transform_8(%arg0: i32) -> (i32, i32) {
    %c0_i32 = arith.constant 0 : i32
    %c0_i32_0 = arith.constant 0 : i32
    %c0_i32_1 = arith.constant 0 : i32
    return %c0_i32, %c0_i32_0 : i32, i32
  }
  func.func @transform_9(%arg0: i32) -> (i32, i32) {
    %c0_i32 = arith.constant 0 : i32
    %c0_i32_0 = arith.constant 0 : i32
    return %arg0, %c0_i32 : i32, i32
  }
}

</mosaic_0001>

<bundles_post_ra>
// kernel: tpu_custom_call.1
= control target key start
LH: loop header
LB: loop body
LE: loop exit
PB: predicated region body
PF: predicated region fallthrough
CT: control target
= control target key end

     0   :  { %6 = vsyncpa [#allocation3], 0  ;;  %s114_s0 = inlined_call_operand.hbm [shape: f32[8,128], index: 0, kind: input, shape index: {}]   ;;  %s115_s1 = inlined_call_operand.hbm [shape: f32[8,128], index: 1, kind: output, shape index: {}]  }
   0x1   :  { %7 = vsyncpa [#allocation4], 0  ;;  %s13_s8 = sshll.u32 %s114_s0, 4  ;;  %s96_s9 = smov [#allocation2]   ;;  %s14_s8 = int_to_ptr.hbm [resolvable:$true] %s13_s8 }
   0x2   :  { %s15_s10 = sshll.u32 %s96_s9, 4  ;;  %s16_s10 = int_to_ptr.vmem [resolvable:$true] %s15_s10 }
   0x3   :  { %18 = dma.hbm_to_vmem [thread:$0]  %s14_s8, 128, %s16_s10, [#allocation3]  }
   0x4   :  { %92 = dma.done.wait [#allocation3], 128  }
   0x5   :  { %93 = vsyncadd [#allocation3], 4294967168  ;;  %s97_s11 = smov [#allocation5]   ;;  %s32_s15 = sshll.u32 %s115_s1, 4  ;;  %v23_v0 = vld [vmem:[#allocation2] sm:$0xff]  ;;  %s33_s15 = int_to_ptr.hbm [resolvable:$true] %s32_s15 }
   0x6   :  { %s30_s12 = sshll.u32 %s97_s11, 4  ;;  %24 = vst [vmem:[#allocation5] sm:$0xff] %v23_v0  ;;  %s31_s12 = int_to_ptr.vmem [resolvable:$true] %s30_s12 }
   0x7   :  { %35 = dma.vmem_to_hbm [thread:$0]  %s31_s12, 128, %s33_s15, [#allocation4]  }
   0x8   :  { %94 = dma.done.wait [#allocation4], 128  }
   0x9   :  { %95 = vsyncadd [#allocation4], 4294967168 }
   0xa   :  { %40 = vsyncpa [#allocation3], 1 }
   0xb   :  { %41 = vsyncpa [#allocation4], 1 }

// kernel: tpu_custom_call.1
= control target key start
LH: loop header
LB: loop body
LE: loop exit
PB: predicated region body
PF: predicated region fallthrough
CT: control target
= control target key end

     0   :  { %14 = vsyncpa [#allocation3], 0  ;;  %s563_s0 = inlined_call_operand.hbm [shape: f32[8,128], index: 0, kind: input, shape index: {}]   ;;  %s564_s1 = inlined_call_operand.hbm [shape: f32[128,128], index: 1, kind: input, shape index: {}]   ;;  %s565_s2 = inlined_call_operand.vmem [shape: f32[1,128], index: 2, kind: input, shape index: {}]   ;;  %s566_s3 = inlined_call_operand.hbm [shape: f32[128,128], index: 3, kind: input, shape index: {}]   ;;  %s567_s4 = inlined_call_operand.vmem [shape: f32[1,128], index: 4, kind: input, shape index: {}]   ;;  %s568_s5 = inlined_call_operand.hbm [shape: f32[128,128], index: 5, kind: input, shape index: {}]   ;;  %s569_s6 = inlined_call_operand.vmem [shape: f32[1,128], index: 6, kind: input, shape index: {}]   ;;  %s570_s7 = inlined_call_operand.hbm [shape: f32[128,128], index: 7, kind: input, shape index: {}]   ;;  %s571_s8 = inlined_call_operand.vmem [shape: f32[1,128], index: 8, kind: input, shape index: {}]   ;;  %s572_s9 = inlined_call_operand.hbm [shape: f32[8,128], index: 9, kind: output, shape index: {}]  }
   0x1   :  { %15 = vsyncpa [#allocation6], 0 }
   0x2   :  { %16 = vsyncpa [#allocation9], 0  ;;  %s33_s11 = sshll.u32 %s564_s1, 4  ;;  %s34_s11 = int_to_ptr.hbm [resolvable:$true] %s33_s11 }
   0x3   :  { %17 = vsyncpa [#allocation4], 0  ;;  %s475_s12 = smov [#allocation5]   ;;  %s63_s16 = sshll.u32 %s568_s5, 4  ;;  %s64_s16 = int_to_ptr.hbm [resolvable:$true] %s63_s16 }
   0x4   :  { %s35_s13 = sshll.u32 %s475_s12, 4  ;;  %s476_s17 = smov 128   ;;  %s36_s13 = int_to_ptr.vmem [resolvable:$true] %s35_s13 }
   0x5   :  { %s477_s18 = smov 8   ;;  %s478_s19 = smov [#allocation8]  }
   0x6   :  { %41 = dma.hbm_to_vmem [thread:$0]  %s34_s11, 2048, %s36_s13, [#allocation6], %s476_s17, %s476_s17, %s477_s18  }
   0x7   :  { %s65_s20 = sshll.u32 %s478_s19, 4  ;;  %s23_s23 = sshll.u32 %s563_s0, 4  ;;  %s66_s20 = int_to_ptr.vmem [resolvable:$true] %s65_s20  ;;  %s24_s23 = int_to_ptr.hbm [resolvable:$true] %s23_s23 }
   0x8   :  { %71 = dma.hbm_to_vmem [thread:$0]  %s64_s16, 2048, %s66_s20, [#allocation9], %s476_s17, %s476_s17, %s477_s18  }
   0x9   :  { %s48_s25 = sshll.u32 %s566_s3, 4  ;;  %s479_s26 = smov [#allocation2]   ;;  %s49_s25 = int_to_ptr.hbm [resolvable:$true] %s48_s25 }
   0xa   :  { %s25_s27 = sshll.u32 %s479_s26, 4  ;;  %s480_s5 = smov [#allocation7]   ;;  %s26_s27 = int_to_ptr.vmem [resolvable:$true] %s25_s27 }
   0xb   :  { %28 = dma.hbm_to_vmem [thread:$0]  %s24_s23, 128, %s26_s27, [#allocation3]  }
   0xc   :  { %s50_s28 = sshll.u32 %s480_s5, 4  ;;  %s78_s10 = sshll.u32 %s570_s7, 4  ;;  %s51_s28 = int_to_ptr.vmem [resolvable:$true] %s50_s28  ;;  %s79_s10 = int_to_ptr.hbm [resolvable:$true] %s78_s10 }
   0xd   :  { %56 = dma.hbm_to_vmem [thread:$0]  %s49_s25, 2048, %s51_s28, [#allocation6], %s476_s17, %s476_s17, %s477_s18  }
   0xe   :  { %s481_s0 = smov [#allocation10]  }
   0xf   :  { %s80_s11 = sshll.u32 %s481_s0, 4  ;;  %s81_s11 = int_to_ptr.vmem [resolvable:$true] %s80_s11 }
  0x10   :  { %86 = dma.hbm_to_vmem [thread:$0]  %s79_s10, 2048, %s81_s11, [#allocation9], %s476_s17, %s476_s17, %s477_s18  }
  0x11   :  { %467 = dma.done.wait [#allocation3], 128  }
  0x12   :  { %468 = vsyncadd [#allocation3], 4294967168 }
  0x13   :  { %469 = dma.done.wait [#allocation6], 4096  }
  0x14   :  { %470 = vsyncadd [#allocation6], 4294963200 }
  0x15   :  { %471 = dma.done.wait [#allocation9], 4096  }
  0x16   :  { %472 = vsyncadd [#allocation9], 4294963200  ;;  %v125_v0 = vld [vmem:[#allocation5 + $0x78] sm:$0xff]  ;;  %v124_v1 = vld [vmem:[#allocation5 + $0x70] sm:$0xff]  ;;  %s482_s16 = smov [#allocation11]  }
  0x17   :  { %130 = vmatpush.msra.mxu0 %v125_v0  ;;  %v123_v2 = vld [vmem:[#allocation5 + $0x68] sm:$0xff]  ;;  %v122_v3 = vld [vmem:[#allocation5 + $0x60] sm:$0xff]  ;;  %v169_v4 = vld [vmem:[#allocation7 + $0x78] sm:$0xff]  ;;  %s289_s17 = sshll.u32 %s482_s16, 4  ;;  %s290_s17 = int_to_ptr.vmem [resolvable:$true] %s289_s17 }
  0x18   :  { %v121_v5 = vld [vmem:[#allocation5 + $0x58] sm:$0xff]  ;;  %174 = vmatpush.msra.mxu1 %v169_v4  ;;  %v168_v6 = vld [vmem:[#allocation7 + $0x70] sm:$0xff]  ;;  %v167_v7 = vld [vmem:[#allocation7 + $0x68] sm:$0xff] }
  0x19   :  { %131 = vmatpush.msra.mxu0 %v124_v1  ;;  %v120_v8 = vld [vmem:[#allocation5 + $0x50] sm:$0xff]  ;;  %v166_v9 = vld [vmem:[#allocation7 + $0x60] sm:$0xff]  ;;  %v119_v10 = vld [vmem:[#allocation5 + $0x48] sm:$0xff] }
  0x1a   :  { %175 = vmatpush.msra.mxu1 %v168_v6  ;;  %v165_v11 = vld [vmem:[#allocation7 + $0x58] sm:$0xff]  ;;  %v118_v12 = vld [vmem:[#allocation5 + $0x40] sm:$0xff]  ;;  %v164_v13 = vld [vmem:[#allocation7 + $0x50] sm:$0xff] }
  0x1b   :  { %132 = vmatpush.msra.mxu0 %v123_v2  ;;  %v117_v14 = vld [vmem:[#allocation5 + $0x38] sm:$0xff]  ;;  %v163_v15 = vld [vmem:[#allocation7 + $0x48] sm:$0xff]  ;;  %v116_v16 = vld [vmem:[#allocation5 + $0x30] sm:$0xff] }
  0x1c   :  { %176 = vmatpush.msra.mxu1 %v167_v7  ;;  %v162_v17 = vld [vmem:[#allocation7 + $0x40] sm:$0xff]  ;;  %v115_v18 = vld [vmem:[#allocation5 + $0x28] sm:$0xff]  ;;  %v113_v20 = vld [vmem:[#allocation5 + $0x18] sm:$0xff] }
  0x1d   :  { %133 = vmatpush.msra.mxu0 %v122_v3  ;;  %v114_v19 = vld [vmem:[#allocation5 + $0x20] sm:$0xff]  ;;  %v112_v21 = vld [vmem:[#allocation5 + $0x10] sm:$0xff]  ;;  %v111_v22 = vld [vmem:[#allocation5 + $0x8] sm:$0xff] }
  0x1e   :  { %177 = vmatpush.msra.mxu1 %v166_v9  ;;  %v110_v23 = vld [vmem:[#allocation5] sm:$0xff]  ;;  %v109_v24 = vld [vmem:[#allocation2] sm:$0xff]  ;;  %v160_v26 = vld [vmem:[#allocation7 + $0x30] sm:$0xff] }
  0x1f   :  { %134 = vmatpush.msra.mxu0 %v121_v5  ;;  %v161_v25 = vld [vmem:[#allocation7 + $0x38] sm:$0xff]  ;;  %v159_v27 = vld [vmem:[#allocation7 + $0x28] sm:$0xff]  ;;  %v158_v28 = vld [vmem:[#allocation7 + $0x20] sm:$0xff] }
  0x20   :  { %178 = vmatpush.msra.mxu1 %v165_v11  ;;  %v157_v29 = vld [vmem:[#allocation7 + $0x18] sm:$0xff]  ;;  %v156_v30 = vld [vmem:[#allocation7 + $0x10] sm:$0xff]  ;;  %v155_v31 = vld [vmem:[#allocation7 + $0x8] sm:$0xff] }
  0x21   :  { %135 = vmatpush.msra.mxu0 %v120_v8  ;;  %v154_v32 = vld [vmem:[#allocation7] sm:$0xff]  ;;  %v213_v33 = vld [vmem:[#allocation8 + $0x78] sm:$0xff]  ;;  %v212_v34 = vld [vmem:[#allocation8 + $0x70] sm:$0xff] }
  0x22   :  { %179 = vmatpush.msra.mxu1 %v164_v13  ;;  %218 = vmatpush.msra.mxu2 %v213_v33  ;;  %v211_v35 = vld [vmem:[#allocation8 + $0x68] sm:$0xff]  ;;  %v210_v36 = vld [vmem:[#allocation8 + $0x60] sm:$0xff]  ;;  %v209_v37 = vld [vmem:[#allocation8 + $0x58] sm:$0xff] }
  0x23   :  { %136 = vmatpush.msra.mxu0 %v119_v10  ;;  %v208_v38 = vld [vmem:[#allocation8 + $0x50] sm:$0xff]  ;;  %v207_v39 = vld [vmem:[#allocation8 + $0x48] sm:$0xff]  ;;  %v206_v40 = vld [vmem:[#allocation8 + $0x40] sm:$0xff] }
  0x24   :  { %180 = vmatpush.msra.mxu1 %v163_v15  ;;  %219 = vmatpush.msra.mxu2 %v212_v34  ;;  %v311_v41 = vld [vmem:[%s565_s2] ss:$0 sm:$0xff]  ;;  %v204_v49 = vld [vmem:[#allocation8 + $0x30] sm:$0xff]  ;;  %v203_v50 = vld [vmem:[#allocation8 + $0x28] sm:$0xff] }
  0x25   :  { %137 = vmatpush.msra.mxu0 %v118_v12  ;;  %v205_v48 = vld [vmem:[#allocation8 + $0x38] sm:$0xff]  ;;  %v202_v51 = vld [vmem:[#allocation8 + $0x20] sm:$0xff]  ;;  %v200_v53 = vld [vmem:[#allocation8 + $0x10] sm:$0xff] }
  0x26   :  { %181 = vmatpush.msra.mxu1 %v162_v17  ;;  %220 = vmatpush.msra.mxu2 %v211_v35  ;;  %v201_v52 = vld [vmem:[#allocation8 + $0x18] sm:$0xff]  ;;  %v199_v54 = vld [vmem:[#allocation8 + $0x8] sm:$0xff]  ;;  %v198_v55 = vld [vmem:[#allocation8] sm:$0xff] }
  0x27   :  { %138 = vmatpush.msra.mxu0 %v117_v14  ;;  %v257_v56 = vld [vmem:[#allocation10 + $0x78] sm:$0xff]  ;;  %v256_v57 = vld [vmem:[#allocation10 + $0x70] sm:$0xff]  ;;  %v255_v58 = vld [vmem:[#allocation10 + $0x68] sm:$0xff] }
  0x28   :  { %182 = vmatpush.msra.mxu1 %v161_v25  ;;  %221 = vmatpush.msra.mxu2 %v210_v36  ;;  %v254_v59 = vld [vmem:[#allocation10 + $0x60] sm:$0xff]  ;;  %v253_v60 = vld [vmem:[#allocation10 + $0x58] sm:$0xff]  ;;  %v252_v61 = vld [vmem:[#allocation10 + $0x50] sm:$0xff] }
  0x29   :  { %139 = vmatpush.msra.mxu0 %v116_v16  ;;  %262 = vmatpush.msra.mxu3 %v257_v56  ;;  %v251_v62 = vld [vmem:[#allocation10 + $0x48] sm:$0xff]  ;;  %v250_v63 = vld [vmem:[#allocation10 + $0x40] sm:$0xff]  ;;  %v312_v0 = vld [vmem:[%s567_s4] ss:$0 sm:$0xff] }
  0x2a   :  { %183 = vmatpush.msra.mxu1 %v160_v26  ;;  %222 = vmatpush.msra.mxu2 %v209_v37  ;;  %v249_v7 = vld [vmem:[#allocation10 + $0x38] sm:$0xff]  ;;  %v248_v8 = vld [vmem:[#allocation10 + $0x30] sm:$0xff]  ;;  %v247_v9 = vld [vmem:[#allocation10 + $0x28] sm:$0xff] }
  0x2b   :  { %140 = vmatpush.msra.mxu0 %v115_v18  ;;  %263 = vmatpush.msra.mxu3 %v256_v57  ;;  %v246_v10 = vld [vmem:[#allocation10 + $0x20] sm:$0xff]  ;;  %v245_v11 = vld [vmem:[#allocation10 + $0x18] sm:$0xff]  ;;  %v244_v12 = vld [vmem:[#allocation10 + $0x10] sm:$0xff] }
  0x2c   :  { %184 = vmatpush.msra.mxu1 %v159_v27  ;;  %223 = vmatpush.msra.mxu2 %v208_v38  ;;  %v243_v13 = vld [vmem:[#allocation10 + $0x8] sm:$0xff]  ;;  %v242_v14 = vld [vmem:[#allocation10] sm:$0xff]  ;;  %v313_v15 = vld [vmem:[%s569_s6] ss:$0 sm:$0xff]  ;;  %s291_s6 = sshll.u32 %s572_s9, 4  ;;  %s292_s6 = int_to_ptr.hbm [resolvable:$true] %s291_s6 }
  0x2d   :  { %141 = vmatpush.msra.mxu0 %v114_v19  ;;  %264 = vmatpush.msra.mxu3 %v255_v58 }
  0x2e   :  { %185 = vmatpush.msra.mxu1 %v158_v28  ;;  %224 = vmatpush.msra.mxu2 %v207_v39 }
  0x2f   :  { %142 = vmatpush.msra.mxu0 %v113_v20  ;;  %265 = vmatpush.msra.mxu3 %v254_v59 }
  0x30   :  { %186 = vmatpush.msra.mxu1 %v157_v29  ;;  %225 = vmatpush.msra.mxu2 %v206_v40 }
  0x31   :  { %143 = vmatpush.msra.mxu0 %v112_v21  ;;  %266 = vmatpush.msra.mxu3 %v253_v60 }
  0x32   :  { %187 = vmatpush.msra.mxu1 %v156_v30  ;;  %226 = vmatpush.msra.mxu2 %v205_v48 }
  0x33   :  { %144 = vmatpush.msra.mxu0 %v111_v22  ;;  %267 = vmatpush.msra.mxu3 %v252_v61  ;;  %v314_v22 = vld [vmem:[%s571_s8] ss:$0 sm:$0xff] }
  0x34   :  { %188 = vmatpush.msra.mxu1 %v155_v31  ;;  %227 = vmatpush.msra.mxu2 %v204_v49 }
  0x35   :  { %145 = vmatpush.msra.mxu0 %v110_v23  ;;  %268 = vmatpush.msra.mxu3 %v251_v62 }
  0x36   :  { %146 = vmatmul.f32.vlgmr.msra.gmra.mxu0 %v109_v24  ;;  %189 = vmatpush.msra.mxu1 %v154_v32 }
  0x37   :  { %228 = vmatpush.msra.mxu2 %v203_v50  ;;  %269 = vmatpush.msra.mxu3 %v250_v63 }
  0x39   :  { %229 = vmatpush.msra.mxu2 %v202_v51  ;;  %270 = vmatpush.msra.mxu3 %v249_v7 }
  0x3b   :  { %230 = vmatpush.msra.mxu2 %v201_v52  ;;  %271 = vmatpush.msra.mxu3 %v248_v8 }
  0x3d   :  { %231 = vmatpush.msra.mxu2 %v200_v53  ;;  %272 = vmatpush.msra.mxu3 %v247_v9 }
  0x3f   :  { %232 = vmatpush.msra.mxu2 %v199_v54  ;;  %273 = vmatpush.msra.mxu3 %v246_v10 }
  0x41   :  { %233 = vmatpush.msra.mxu2 %v198_v55  ;;  %274 = vmatpush.msra.mxu3 %v245_v11 }
  0x43   :  { %275 = vmatpush.msra.mxu3 %v244_v12 }
  0x45   :  { %276 = vmatpush.msra.mxu3 %v243_v13 }
  0x47   :  { %277 = vmatpush.msra.mxu3 %v242_v14 }
  0xb3   :  { %v147_v42 = vpop.f32.mrf.mxu0 }
  0xb4   :  { %v148_v43 = vadd.f32 %v311_v41, %v147_v42 }
  0xb6   :  { %v150_v44 = vmul.f32 0.5, %v148_v43 }
  0xb8   :  { %315 = vtanh.f32 %v150_v44 }
  0xbe   :  { %v316_v45 = vpop.eup %315 }
  0xbf   :  { %v152_v46 = vadd.f32 1.0, %v316_v45 }
  0xc1   :  { %v153_v47 = vmul.f32 0.5, %v152_v46 }
  0xc3   :  { %190 = vmatmul.f32.vlgmr.msra.gmra.mxu1 %v153_v47 }
 0x140   :  { %v191_v1 = vpop.f32.mrf.mxu1 }
 0x141   :  { %v192_v2 = vadd.f32 %v312_v0, %v191_v1 }
 0x143   :  { %v194_v3 = vmul.f32 0.5, %v192_v2 }
 0x145   :  { %317 = vtanh.f32 %v194_v3 }
 0x14b   :  { %v318_v4 = vpop.eup %317 }
 0x14c   :  { %v196_v5 = vadd.f32 1.0, %v318_v4 }
 0x14e   :  { %v197_v6 = vmul.f32 0.5, %v196_v5 }
 0x150   :  { %234 = vmatmul.f32.vlgmr.msra.gmra.mxu2 %v197_v6 }
 0x1d3   :  { %v235_v16 = vpop.f32.mrf.mxu2 }
 0x1d4   :  { %v236_v17 = vadd.f32 %v313_v15, %v235_v16 }
 0x1d6   :  { %v238_v18 = vmul.f32 0.5, %v236_v17 }
 0x1d8   :  { %319 = vtanh.f32 %v238_v18 }
 0x1de   :  { %v320_v19 = vpop.eup %319 }
 0x1df   :  { %v240_v20 = vadd.f32 1.0, %v320_v19 }
 0x1e1   :  { %v241_v21 = vmul.f32 0.5, %v240_v20 }
 0x1e3   :  { %278 = vmatmul.f32.vlgmr.msra.gmra.mxu3 %v241_v21 }
 0x266   :  { %v279_v23 = vpop.f32.mrf.mxu3 }
 0x267   :  { %v280_v24 = vadd.f32 %v314_v22, %v279_v23 }
 0x269   :  { %321 = vtanh.f32 %v280_v24 }
 0x26f   :  { %v322_v25 = vpop.eup %321 }
 0x270   :  { %283 = vst [vmem:[#allocation11] sm:$0xff] %v322_v25 }
 0x271   :  { %294 = dma.vmem_to_hbm [thread:$0]  %s290_s17, 128, %s292_s6, [#allocation4]  }
 0x272   :  { %473 = dma.done.wait [#allocation4], 128  }
 0x273   :  { %474 = vsyncadd [#allocation4], 4294967168 }
 0x274   :  { %299 = vsyncpa [#allocation3], 1 }
 0x275   :  { %300 = vsyncpa [#allocation6], 1 }
 0x276   :  { %301 = vsyncpa [#allocation9], 1 }
 0x277   :  { %302 = vsyncpa [#allocation4], 1 }

</bundles_post_ra>
